<compile_context>
chip_gen: v7x
topology: tpu7x:2x2x1
jax: 0.10.0
libtpu: 0.0.40
codegen_flags: <defaults>
</compile_context>

<pallas_src>
import jax
import jax.numpy as jnp
from jax.experimental import pallas as pl
from jax.experimental.pallas import tpu as pltpu


def _round_up(x: int, m: int) -> int:
    return ((x + m - 1) // m) * m


def critic_kernel(x_ref, w1t_ref, b1_ref, w2t_ref, b2_ref, w3t_ref, b3_ref, out_ref):
    """One batch tile, feature-major: x is (in_dim, tm), hiddens are (H, tm)."""
    # fc1 + ReLU:  (H, in_dim) @ (in_dim, tm) -> (H, tm), f32 accumulation.
    h1 = jnp.dot(w1t_ref[...], x_ref[...], preferred_element_type=jnp.float32) + b1_ref[...]
    h1 = jnp.maximum(h1, 0.0).astype(w2t_ref.dtype)

    # fc2 + ReLU:  (H, H) @ (H, tm) -> (H, tm)
    h2 = jnp.dot(w2t_ref[...], h1, preferred_element_type=jnp.float32) + b2_ref[...]
    h2 = jnp.maximum(h2, 0.0).astype(w3t_ref.dtype)

    # q head:  (1, H) @ (H, tm) -> lane-dense (1, tm) row, stored unmasked.
    q = jnp.dot(w3t_ref[...], h2, preferred_element_type=jnp.float32) + b3_ref[0, 0]
    out_ref[...] = q.astype(out_ref.dtype)


def critic_forward(state, action, params, *, block_b: int = 8192,
                   compute_dtype=jnp.bfloat16):
    """Pallas forward pass of CriticNetwork. Returns (B, 1) float32 Q-values."""
    B, state_dim = state.shape
    action_dim = action.shape[1]
    w1, b1, w2, b2, w3, b3 = params
    hidden_dim = w1.shape[1]
    in_dim = state_dim + action_dim

    # ---- batch tiling: big lane-dense tiles, >= 2 grid steps when possible (v7x megacore)
    block_b = max(128, _round_up(block_b, 128))
    b_pad128 = _round_up(B, 128)
    if b_pad128 >= 256:
        tm = min(block_b, _round_up(pl.cdiv(B, 2), 128))
    else:
        tm = b_pad128
    b_pad = _round_up(B, tm)
    grid = (b_pad // tm,)

    # ---- wrapper data prep (single fused XLA pass: cast + concat + transpose + pad)
    x = jnp.concatenate([state, action], axis=-1).astype(compute_dtype)   # (B, in_dim)
    x_t = jnp.pad(x.T, ((0, 0), (0, b_pad - B)))                          # (in_dim, b_pad)

    # Transposed (feature-major) weights; biases as (H, 1) columns; b3 scalar -> SMEM.
    w1t = w1.T.astype(compute_dtype)                   # (H, in_dim)
    w2t = w2.T.astype(compute_dtype)                   # (H, H)
    w3t = w3.T.astype(compute_dtype)                   # (1, H)
    b1c = b1.astype(jnp.float32).reshape(hidden_dim, 1)
    b2c = b2.astype(jnp.float32).reshape(hidden_dim, 1)
    b3s = b3.astype(jnp.float32).reshape(1, 1)

    def resident(shape):
        # Constant block index -> stays resident in VMEM across the whole grid.
        return pl.BlockSpec(shape, lambda i: (0, 0))

    in_specs = [
        pl.BlockSpec((in_dim, tm), lambda i: (0, i)),        # streamed activations
        resident((hidden_dim, in_dim)),                      # W1^T
        resident((hidden_dim, 1)),                           # b1
        resident((hidden_dim, hidden_dim)),                  # W2^T
        resident((hidden_dim, 1)),                           # b2
        resident((1, hidden_dim)),                           # W3^T
        pl.BlockSpec(memory_space=pltpu.MemorySpace.SMEM),   # b3 scalar
    ]
    out_specs = pl.BlockSpec((1, tm), lambda i: (0, i))      # lane-dense (1, tm) row

    itemsize = jnp.dtype(compute_dtype).itemsize
    weight_elems = in_dim * hidden_dim + hidden_dim * hidden_dim + hidden_dim
    flops = 2 * b_pad * weight_elems
    bytes_accessed = (b_pad * in_dim * itemsize              # streamed activations
                      + weight_elems * itemsize              # weights
                      + (2 * hidden_dim + 1) * 4             # biases (f32)
                      + b_pad * 4)                           # output (f32)

    q_row = pl.pallas_call(
        critic_kernel,
        out_shape=jax.ShapeDtypeStruct((1, b_pad), jnp.float32),
        grid=grid,
        in_specs=in_specs,
        out_specs=out_specs,
        compiler_params=pltpu.CompilerParams(
            dimension_semantics=("parallel",)),
        cost_estimate=pl.CostEstimate(
            flops=flops, transcendentals=0, bytes_accessed=bytes_accessed),
    )(x_t, w1t, b1c, w2t, b2c, w3t, b3s)

    return q_row[0, :B].reshape(B, 1)


def init_params(key, state_dim, action_dim, hidden_dim):
    """PyTorch nn.Linear-style init (uniform +/- 1/sqrt(fan_in)); weights stored [in, out]."""
    def linear(key, fan_in, fan_out):
        kw, kb = jax.random.split(key)
        bound = 1.0 / jnp.sqrt(fan_in)
        w = jax.random.uniform(kw, (fan_in, fan_out), jnp.float32, -bound, bound)
        b = jax.random.uniform(kb, (1, fan_out), jnp.float32, -bound, bound)
        return w, b

    k1, k2, k3 = jax.random.split(key, 3)
    in_dim = state_dim + action_dim
    w1, b1 = linear(k1, in_dim, hidden_dim)
    w2, b2 = linear(k2, hidden_dim, hidden_dim)
    w3, b3 = linear(k3, hidden_dim, 1)
    return (w1, b1, w2, b2, w3, b3)


def critic_ref(state, action, params, compute_dtype=jnp.bfloat16):
    """Pure-JAX reference matching the kernel's precision (bf16 operands, f32 accumulation)."""
    w1, b1, w2, b2, w3, b3 = params
    x = jnp.concatenate([state, action], axis=-1).astype(compute_dtype)
    h1 = jnp.maximum(jnp.dot(x, w1.astype(compute_dtype),
                             preferred_element_type=jnp.float32) + b1, 0.0)
    h2 = jnp.maximum(jnp.dot(h1.astype(compute_dtype), w2.astype(compute_dtype),
                             preferred_element_type=jnp.float32) + b2, 0.0)
    return jnp.dot(h2.astype(compute_dtype), w3.astype(compute_dtype),
                   preferred_element_type=jnp.float32) + b3


if __name__ == "__main__":
    state_dim, action_dim, hidden_dim = 12, 4, 32

    key = jax.random.PRNGKey(0)
    k_params, k_state, k_action = jax.random.split(key, 3)
    params = init_params(k_params, state_dim, action_dim, hidden_dim)

    # Small smoke test (single grid step).
    batch = 8
    state = jax.random.normal(k_state, (batch, state_dim), jnp.float32)
    action = jax.random.normal(k_action, (batch, action_dim), jnp.float32)
    q = critic_forward(state, action, params)
    jax.block_until_ready(q)
    q_ref = critic_ref(state, action, params)
    assert q.shape == (batch, 1)
    assert jnp.allclose(q, q_ref, atol=1e-4, rtol=1e-3), "mismatch vs. reference (B=8)"

    # Multi-tile test (padding + grid of 2 parallel batch tiles).
    batch2 = 384
    k_s2, k_a2 = jax.random.split(jax.random.PRNGKey(1))
    state2 = jax.random.normal(k_s2, (batch2, state_dim), jnp.float32)
    action2 = jax.random.normal(k_a2, (batch2, action_dim), jnp.float32)
    q2 = critic_forward(state2, action2, params)
    jax.block_until_ready(q2)
    q2_ref = critic_ref(state2, action2, params)
    assert q2.shape == (batch2, 1)
    assert jnp.allclose(q2, q2_ref, atol=1e-4, rtol=1e-3), "mismatch vs. reference (B=384)"

    print("KERNEL_OK")
</pallas_src>

<mosaic_0001>
module attributes {stable_mosaic.version = 11 : i64} {
  func.func @critic_kernel(%arg0: i32, %arg1: memref<16x128xbf16, #tpu.memory_space<vmem>>, %arg2: memref<32x16xbf16, #tpu.memory_space<vmem>>, %arg3: memref<32x1xf32, #tpu.memory_space<vmem>>, %arg4: memref<32x32xbf16, #tpu.memory_space<vmem>>, %arg5: memref<32x1xf32, #tpu.memory_space<vmem>>, %arg6: memref<1x32xbf16, #tpu.memory_space<vmem>>, %arg7: memref<1x1xf32, #tpu.memory_space<smem>>, %arg8: memref<1x128xf32, #tpu.memory_space<vmem>>) attributes {dimension_semantics = [#tpu.dimension_semantics<parallel>], iteration_bounds = array<i64: 1>, scalar_prefetch = 0 : i64, scratch_operands = 0 : i64, tpu.core_type = #tpu.core_type<tc>, window_params = [{transform_indices = @transform_0, window_bounds = array<i64: 16, 128>}, {pipeline_mode = #tpu.pipeline_mode<synchronous>, transform_indices = @transform_1, window_bounds = array<i64: 32, 16>}, {pipeline_mode = #tpu.pipeline_mode<synchronous>, transform_indices = @transform_2, window_bounds = array<i64: 32, 1>}, {pipeline_mode = #tpu.pipeline_mode<synchronous>, transform_indices = @transform_3, window_bounds = array<i64: 32, 32>}, {pipeline_mode = #tpu.pipeline_mode<synchronous>, transform_indices = @transform_4, window_bounds = array<i64: 32, 1>}, {pipeline_mode = #tpu.pipeline_mode<synchronous>, transform_indices = @transform_5, window_bounds = array<i64: 1, 32>}, {transform_indices = @transform_6, window_bounds = array<i64: 1, 1>}, {transform_indices = @transform_7, window_bounds = array<i64: 1, 128>}]} {
    %c0 = arith.constant 0 : index
    %c0_0 = arith.constant 0 : index
    %0 = vector.load %arg2[%c0, %c0_0] : memref<32x16xbf16, #tpu.memory_space<vmem>>, vector<32x16xbf16>
    %c0_1 = arith.constant 0 : index
    %c0_2 = arith.constant 0 : index
    %1 = vector.load %arg1[%c0_1, %c0_2] : memref<16x128xbf16, #tpu.memory_space<vmem>>, vector<16x128xbf16>
    %cst = arith.constant dense<0.000000e+00> : vector<32x128xf32>
    %2 = tpu.matmul %0, %1, %cst {dimension_numbers = #tpu.dot_dimension_numbers<[1], [0], [0], [1], [0, 0, 1, 1], [], []>} : vector<32x16xbf16>, vector<16x128xbf16>, vector<32x128xf32> -> vector<32x128xf32>
    %c0_3 = arith.constant 0 : index
    %c0_4 = arith.constant 0 : index
    %3 = vector.load %arg3[%c0_3, %c0_4] : memref<32x1xf32, #tpu.memory_space<vmem>>, vector<32x1xf32>
    %4 = vector.broadcast %3 : vector<32x1xf32> to vector<32x128xf32>
    %5 = arith.addf %2, %4 : vector<32x128xf32>
    %cst_5 = arith.constant 0.000000e+00 : f32
    %6 = vector.broadcast %cst_5 : f32 to vector<32x128xf32>
    %7 = arith.maximumf %5, %6 : vector<32x128xf32>
    %8 = arith.truncf %7 : vector<32x128xf32> to vector<32x128xbf16>
    %c0_6 = arith.constant 0 : index
    %c0_7 = arith.constant 0 : index
    %9 = vector.load %arg4[%c0_6, %c0_7] : memref<32x32xbf16, #tpu.memory_space<vmem>>, vector<32x32xbf16>
    %cst_8 = arith.constant dense<0.000000e+00> : vector<32x128xf32>
    %10 = tpu.matmul %9, %8, %cst_8 {dimension_numbers = #tpu.dot_dimension_numbers<[1], [0], [0], [1], [0, 0, 1, 1], [], []>} : vector<32x32xbf16>, vector<32x128xbf16>, vector<32x128xf32> -> vector<32x128xf32>
    %c0_9 = arith.constant 0 : index
    %c0_10 = arith.constant 0 : index
    %11 = vector.load %arg5[%c0_9, %c0_10] : memref<32x1xf32, #tpu.memory_space<vmem>>, vector<32x1xf32>
    %12 = vector.broadcast %11 : vector<32x1xf32> to vector<32x128xf32>
    %13 = arith.addf %10, %12 : vector<32x128xf32>
    %cst_11 = arith.constant 0.000000e+00 : f32
    %14 = vector.broadcast %cst_11 : f32 to vector<32x128xf32>
    %15 = arith.maximumf %13, %14 : vector<32x128xf32>
    %16 = arith.truncf %15 : vector<32x128xf32> to vector<32x128xbf16>
    %c0_12 = arith.constant 0 : index
    %c0_13 = arith.constant 0 : index
    %17 = vector.load %arg6[%c0_12, %c0_13] : memref<1x32xbf16, #tpu.memory_space<vmem>>, vector<1x32xbf16>
    %cst_14 = arith.constant dense<0.000000e+00> : vector<1x128xf32>
    %18 = tpu.matmul %17, %16, %cst_14 {dimension_numbers = #tpu.dot_dimension_numbers<[1], [0], [0], [1], [0, 0, 1, 1], [], []>} : vector<1x32xbf16>, vector<32x128xbf16>, vector<1x128xf32> -> vector<1x128xf32>
    %c0_15 = arith.constant 0 : index
    %c0_16 = arith.constant 0 : index
    %19 = memref.load %arg7[%c0_15, %c0_16] : memref<1x1xf32, #tpu.memory_space<smem>>
    %20 = vector.broadcast %19 : f32 to vector<1x128xf32>
    %21 = arith.addf %18, %20 : vector<1x128xf32>
    %c0_17 = arith.constant 0 : index
    %c0_18 = arith.constant 0 : index
    %22 = vector.load %arg8[%c0_17, %c0_18] : memref<1x128xf32, #tpu.memory_space<vmem>>, vector<1x128xf32>
    tpu.vector_store %arg8[%c0_17, %c0_18], %21 {strides = array<i32>} : memref<1x128xf32, #tpu.memory_space<vmem>>, vector<1x128xf32>,
    return
  }
  func.func @transform_0(%arg0: i32) -> (i32, i32) {
    %c0_i32 = arith.constant 0 : i32
    %c0_i32_0 = arith.constant 0 : i32
    return %c0_i32, %arg0 : i32, i32
  }
  func.func @transform_1(%arg0: i32) -> (i32, i32) {
    %c0_i32 = arith.constant 0 : i32
    %c0_i32_0 = arith.constant 0 : i32
    %c0_i32_1 = arith.constant 0 : i32
    return %c0_i32, %c0_i32_0 : i32, i32
  }
  func.func @transform_2(%arg0: i32) -> (i32, i32) {
    %c0_i32 = arith.constant 0 : i32
    %c0_i32_0 = arith.constant 0 : i32
    %c0_i32_1 = arith.constant 0 : i32
    return %c0_i32, %c0_i32_0 : i32, i32
  }
  func.func @transform_3(%arg0: i32) -> (i32, i32) {
    %c0_i32 = arith.constant 0 : i32
    %c0_i32_0 = arith.constant 0 : i32
    %c0_i32_1 = arith.constant 0 : i32
    return %c0_i32, %c0_i32_0 : i32, i32
  }
  func.func @transform_4(%arg0: i32) -> (i32, i32) {
    %c0_i32 = arith.constant 0 : i32
    %c0_i32_0 = arith.constant 0 : i32
    %c0_i32_1 = arith.constant 0 : i32
    return %c0_i32, %c0_i32_0 : i32, i32
  }
  func.func @transform_5(%arg0: i32) -> (i32, i32) {
    %c0_i32 = arith.constant 0 : i32
    %c0_i32_0 = arith.constant 0 : i32
    %c0_i32_1 = arith.constant 0 : i32
    return %c0_i32, %c0_i32_0 : i32, i32
  }
  func.func @transform_6(%arg0: i32) -> (i32, i32) {
    %c0_i32 = arith.constant 0 : i32
    %c0_i32_0 = arith.constant 0 : i32
    %c0_i32_1 = arith.constant 0 : i32
    return %c0_i32, %c0_i32_0 : i32, i32
  }
  func.func @transform_7(%arg0: i32) -> (i32, i32) {
    %c0_i32 = arith.constant 0 : i32
    %c0_i32_0 = arith.constant 0 : i32
    return %c0_i32, %arg0 : i32, i32
  }
}

</mosaic_0001>

<bundles_post_ra>
// kernel: tpu_custom_call.1
= control target key start
LH: loop header
LB: loop body
LE: loop exit
PB: predicated region body
PF: predicated region fallthrough
CT: control target
= control target key end

     0   :  { %vm75_vm0 = vcmask 130048   ;;  %v375_v3 = vmov 0   ;;  %s479_s0 = inlined_call_operand.vmem [shape: bf16[16,128], index: 0, kind: input, shape index: {}]   ;;  %s480_s1 = inlined_call_operand.vmem [shape: bf16[32,16], index: 1, kind: input, shape index: {}]   ;;  %s481_s2 = inlined_call_operand.vmem [shape: f32[32,1], index: 2, kind: input, shape index: {}]   ;;  %s482_s3 = inlined_call_operand.vmem [shape: bf16[32,32], index: 3, kind: input, shape index: {}]   ;;  %s483_s4 = inlined_call_operand.vmem [shape: f32[32,1], index: 4, kind: input, shape index: {}]   ;;  %s484_s5 = inlined_call_operand.vmem [shape: bf16[1,32], index: 5, kind: input, shape index: {}]   ;;  %s485_s6 = inlined_call_operand.<no memory space> [shape: f32[1,1], index: 6, kind: input, shape index: {}]   ;;  %s486_s7 = inlined_call_operand.hbm [shape: f32[1,128], index: 7, kind: output, shape index: {}]  }
   0x1   :  { %v346_v0 = vld [vmem:[%s479_s0] sm:$0xff]   ;;  %v348_v2 = vld [vmem:[%s480_s1 + $0x8] sm:$0xff]   ;;  %344 = vset.pattern.permute.xlu0 %v375_v3  ;;  %v37_v5 = vld [vmem:[%s481_s2 + $0x10] sm:$0xff]  ;;  %345 = vset.pattern.permute.xlu1 %v375_v3 }
   0x2   :  { %v347_v1 = vld [vmem:[%s480_s1] sm:$0xff]   ;;  %318 = vmatprep.subr.bf16.mxu0 %v346_v0  ;;  %51 = vperm.xlu1 %345, %v37_v5   ;;  %v36_v6 = vld [vmem:[%s481_s2 + $0x8] sm:$0xff]  ;;  %v38_v7 = vld [vmem:[%s481_s2 + $0x18] sm:$0xff] }
   0x3   :  { %319 = vmatpush3.bf16.msra.mxu0 %v346_v0  ;;  %320 = vmatprep.mubr.msk.bf16.mxu0 %vm75_vm0, %v347_v1  ;;  %v35_v4 = vld [vmem:[%s481_s2] sm:$0xff] }
   0x4   :  { %41 = vperm.xlu0 %344, %v35_v4  }
   0x6   :  { %321 = vmatmul.mubr.msk.bf16.vlgmr.msra.gmra.mrb[0].mxu0 %vm75_vm0, %v348_v2 }
   0x7   :  { %13 = vsyncpa [#allocation4], 0  ;;  %56 = vperm.xlu1 %345, %v38_v7   ;;  %v141_v8 = vld [vmem:[%s483_s4] sm:$0xff]  ;;  %v142_v9 = vld [vmem:[%s483_s4 + $0x8] sm:$0xff]  ;;  %vm175_vm1 = vcmask 261120   ;;  %v376_v32 = vmov 0.0   ;;  %v239_v52 = vstv %s485_s6 }
   0x8   :  { %46 = vperm.xlu0 %344, %v36_v6   ;;  %v143_v10 = vld [vmem:[%s483_s4 + $0x10] sm:$0xff]  ;;  %v144_v11 = vld [vmem:[%s483_s4 + $0x18] sm:$0xff]  ;;  %v349_v12 = vld [vmem:[%s482_s3] sm:$0xff]   ;;  %332 = vmatprep.subr.bf16.mxu0 %v376_v32  ;;  %vm377_vm2 = vmmov 0   ;;  %s378_s26 = smov [#allocation3]  }
   0x9   :  { %328 = vmatprep.mubr.msk.bf16.mxu1 %vm175_vm1, %v349_v12  ;;  %v350_v31 = vld [vmem:[%s482_s3 + $0x8] sm:$0xff]   ;;  %336 = vmatprep.mubr.msk.bf16.mxu0 %vm377_vm2, %v376_v32  ;;  %v237_v51 = vld [vmem:[%s484_s5] sm:$0x1]  ;;  %s290_s27 = sshll.u32 %s378_s26, 4  ;;  %s291_s27 = int_to_ptr.vmem [resolvable:$true] %s290_s27 }
   0xa   :  { %s351_s28 = scalar_lea.vmem %s291_s27, 16  ;;  %s355_s29 = scalar_lea.vmem %s291_s27, 32 }
   0xb   :  { %152 = vperm.xlu1 %345, %v142_v9   ;;  %p352_p0 = scmp.ne.s32.totalorder %s291_s27, %s351_s28  ;;  %p356_p1 = scmp.lt.s32.totalorder %s291_s27, %s291_s27 }
   0xc   :  { %147 = vperm.xlu0 %344, %v141_v8   ;;  %p357_p2 = scmp.lt.s32.totalorder %s355_s29, %s351_s28 }
   0xe   :  { %p358_p3 = por %p357_p2, %p356_p1 }
   0xf   :  { %162 = vperm.xlu1 %345, %v144_v11  }
  0x10   :  { %157 = vperm.xlu0 %344, %v143_v10   ;;  %p359_p4 = pnand %p358_p3, %p352_p0 }
  0x81   :  { %v52_v13 = vpop.permute.xlu1 %51 }
  0x83   :  { %v42_v14 = vpop.permute.xlu0 %41 }
  0x86   :  { %v57_v18 = vpop.permute.xlu1 %56 }
  0x87   :  { %v47_v21 = vpop.permute.xlu0 %46 }
  0x8a   :  { %v153_v34 = vpop.permute.xlu1 %152 }
  0x8b   :  { %v148_v33 = vpop.permute.xlu0 %147 }
  0x8e   :  { %v163_v39 = vpop.permute.xlu1 %162 }
  0x8f   :  { %v158_v35 = vpop.permute.xlu0 %157 }
  0xd9   :  { %v322_v15 = vpop.f32.mrb[0].mxu0 }
  0xda   :  { %v125_v16 = vadd.f32 %v322_v15, %v52_v13  ;;  %v116_v17 = vpop.f32.mrb[1].mxu0 }
  0xdb   :  { %v117_v19 = vadd.f32 %v116_v17, %v42_v14  ;;  %v323_v20 = vpop.f32.mrb[2].mxu0 }
  0xdc   :  { %v128_v22 = vadd.f32 %v323_v20, %v57_v18  ;;  %v119_v23 = vpop.f32.mrb[3].mxu0  ;;  %v133_v25 = vmax.f32 %v125_v16, 0.0 }
  0xdd   :  { %v120_v24 = vadd.f32 %v119_v23, %v47_v21  ;;  %v131_v27 = vmax.f32 %v117_v19, 0.0 }
  0xde   :  { %v134_v26 = vmax.f32 %v128_v22, 0.0 }
  0xdf   :  { %v132_v28 = vmax.f32 %v120_v24, 0.0 }
  0xe0   :  { %v136_v29 = vpack.c.bf16 %v134_v26, %v133_v25 }
  0xe1   :  { %v135_v30 = vpack.c.bf16 %v132_v28, %v131_v27 }
  0xe3   :  { %324 = vmatprep.subr.bf16.mxu1 %v135_v30 }
  0xe4   :  { %325 = vmatpush3.bf16.msra.mxu1 %v135_v30 }
  0xe5   :  { %326 = vmatprep.subr.bf16.mxu1 %v136_v29 }
  0xe8   :  { %327 = vmatpush3.bf16.msra.mxu1 %v136_v29 }
  0xeb   :  { %329 = vmatmul.mubr.msk.bf16.vlgmr.msra.gmra.mrb[0].mxu1 %vm175_vm1, %v350_v31 }
 0x1be   :  { %v330_v36 = vpop.f32.mrb[0].mxu1 }
 0x1bf   :  { %v225_v37 = vadd.f32 %v330_v36, %v158_v35  ;;  %v216_v38 = vpop.f32.mrb[1].mxu1 }
 0x1c0   :  { %v217_v40 = vadd.f32 %v216_v38, %v148_v33  ;;  %v331_v41 = vpop.f32.mrb[2].mxu1 }
 0x1c1   :  { %v228_v42 = vadd.f32 %v331_v41, %v163_v39  ;;  %v219_v43 = vpop.f32.mrb[3].mxu1  ;;  %v233_v45 = vmax.f32 %v225_v37, 0.0 }
 0x1c2   :  { %v220_v44 = vadd.f32 %v219_v43, %v153_v34  ;;  %v231_v47 = vmax.f32 %v217_v40, 0.0 }
 0x1c3   :  { %v234_v46 = vmax.f32 %v228_v42, 0.0 }
 0x1c4   :  { %v232_v48 = vmax.f32 %v220_v44, 0.0 }
 0x1c5   :  { %v236_v49 = vpack.c.bf16 %v234_v46, %v233_v45 }
 0x1c6   :  { %v235_v50 = vpack.c.bf16 %v232_v48, %v231_v47 }
 0x1c8   :  { %333 = vmatpush3.bf16.msra.mxu0 %v235_v50 }
 0x1c9   :  { %334 = vmatprep.subr.bf16.mxu0 %v376_v32 }
 0x1cc   :  { %335 = vmatpush3.bf16.msra.mxu0 %v236_v49 }
 0x1cf   :  { %337 = vmatmul.mubr.msk.bf16.vlgmr.msra.gmra.mrb[4].mxu0 %vm175_vm1, %v237_v51 }
 0x2a2   :  { %v277_v53 = vpop.f32.mrb[4].mxu0 }
 0x2a3   :  { %v278_v54 = vadd.f32 %v277_v53, %v239_v52  ;;  %v338_v55 = vpop.f32.mrb[5].mxu0 }
 0x2a4   :  { %v280_v56 = vpop.f32.mrb[6].mxu0 }
 0x2a5   :  { %283 = vst [vmem:[#allocation3] sm:$0x1] %v278_v54  ;;  %v339_v57 = vpop.f32.mrb[7].mxu0 }
 0x2a6   :  { %362 = shalt.err (!%p359_p4)
}
 0x2a7   :  { %s363_s6 = scalar_lea.hbm %s486_s7, 16 }
 0x2a8   :  { %p364_p5 = scmp.ne.s32.totalorder %s486_s7, %s363_s6  ;;  %p367_p6 = scmp.lt.u32.totalorder %s363_s6, %s486_s7 }
 0x2aa   :  { %p369_p7 = pnand %p367_p6, %p364_p5 }
 0x2ac   :  { %372 = shalt.err (!%p369_p7)
}
 0x2ad   :  { %293 = dma.vmem_to_hbm [thread:$0]  %s291_s27, 16, %s486_s7, [#allocation4]  }
 0x2ae   :  { %373 = dma.done.wait [#allocation4], 16  }
 0x2af   :  { %374 = vsyncadd [#allocation4], 4294967280 }
 0x2b0   :  { %297 = vsyncpa [#allocation4], 1 }

</bundles_post_ra>
